<compile_context>
chip_gen: v5e
topology: v5e:2x2
jax: 0.10.0
libtpu: 0.0.40
codegen_flags: <defaults>
</compile_context>

<pallas_src>
import functools

import jax
import jax.numpy as jnp
from jax.experimental import pallas as pl
from jax.experimental.pallas import tpu as pltpu

LANE = 128      # feature dims padded to a multiple of this (lane-dense)
SUBLANE_BF16 = 16   # batch padded to a multiple of this (bf16 sublane packing)


def _round_up(x, m):
    return (x + m - 1) // m * m


def _fused_mlp_kernel(x_ref, w_first_ref, b_first_ref, w_mid_ref, b_mid_ref,
                      w_out_ref, b_out_ref, o_ref, act_ref, *, has_mid):
    """One batch-tile of the whole MLP; activations never leave VMEM.

    Grid = (batch_tiles, layer_steps). Per grid step:
      l == 0      : first layer  (x @ W0 + b0, ReLU)  -> act (bf16)
      every step  : hidden layer l (act @ Wl + bl, ReLU) -> act   [if has_mid]
      l == last   : output layer (act @ Wo + bo)      -> o_ref

    x_ref       (MB, Din_p)    bf16   padded input tile
    w_first_ref (Din_p, Hp)    bf16   resident across the whole grid
    b_first_ref (1, Hp)        f32
    w_mid_ref   (1, Hp, Hp)    bf16   double-buffered along the layer axis
    b_mid_ref   (1, 1, Hp)     f32
    w_out_ref   (Hp, Dout_p)   bf16   resident
    b_out_ref   (1, Dout_p)    f32
    o_ref       (MB, Dout_p)   f32    written only at the last layer step
    act_ref     (MB, Hp)       bf16   VMEM-resident activation scratch
    """
    l = pl.program_id(1)
    n_l = pl.num_programs(1)

    @pl.when(l == 0)
    def _():
        y = jnp.dot(x_ref[...], w_first_ref[...],
                    preferred_element_type=jnp.float32)
        y = y + b_first_ref[...]
        act_ref[...] = jnp.maximum(y, 0.0).astype(act_ref.dtype)

    if has_mid:  # static: there is at least one hidden->hidden layer
        y = jnp.dot(act_ref[...], w_mid_ref[0],
                    preferred_element_type=jnp.float32)
        y = y + b_mid_ref[0]
        act_ref[...] = jnp.maximum(y, 0.0).astype(act_ref.dtype)

    @pl.when(l == n_l - 1)
    def _():
        y = jnp.dot(act_ref[...], w_out_ref[...],
                    preferred_element_type=jnp.float32)
        y = y + b_out_ref[...]
        o_ref[...] = y.astype(o_ref.dtype)


def prepare_mlp_params(params):
    """Pad + stack the weights ONCE (cache the result across forward calls).

    Zero padding is numerically exact: padded input columns hit zero weight
    rows; padded output columns get zero weight columns + zero bias, ReLU
    keeps them at 0, so they stay inert through later layers.
    """
    n_layers = len(params)
    assert n_layers >= 2, "need at least one hidden layer + output layer"
    input_dim = params[0][0].shape[0]
    hidden_dim = params[0][0].shape[1]
    output_dim = params[-1][0].shape[1]
    n_mid = n_layers - 2  # hidden->hidden layers

    din_p = _round_up(input_dim, LANE)
    hp = _round_up(hidden_dim, LANE)
    dout_p = _round_up(output_dim, LANE)

    w0, b0 = params[0]
    w_first = (jnp.zeros((din_p, hp), jnp.bfloat16)
               .at[:input_dim, :hidden_dim].set(w0.astype(jnp.bfloat16)))
    b_first = (jnp.zeros((1, hp), jnp.float32)
               .at[0, :hidden_dim].set(b0.reshape(-1).astype(jnp.float32)))

    n_mid_stack = max(n_mid, 1)  # keep a (1, Hp, Hp) dummy if there are none
    w_mid = jnp.zeros((n_mid_stack, hp, hp), jnp.bfloat16)
    b_mid = jnp.zeros((n_mid_stack, 1, hp), jnp.float32)
    for i in range(n_mid):
        w, b = params[1 + i]
        w_mid = w_mid.at[i, :hidden_dim, :hidden_dim].set(w.astype(jnp.bfloat16))
        b_mid = b_mid.at[i, 0, :hidden_dim].set(
            b.reshape(-1).astype(jnp.float32))

    wl, bl = params[-1]
    w_out = (jnp.zeros((hp, dout_p), jnp.bfloat16)
             .at[:hidden_dim, :output_dim].set(wl.astype(jnp.bfloat16)))
    b_out = (jnp.zeros((1, dout_p), jnp.float32)
             .at[0, :output_dim].set(bl.reshape(-1).astype(jnp.float32)))

    packed = (w_first, b_first, w_mid, b_mid, w_out, b_out)
    return packed, (input_dim, output_dim, n_mid)


def mlp_forward(x, w_first, b_first, w_mid, b_mid, w_out, b_out,
                *, input_dim, output_dim, n_mid):
    """Matches MLP.forward: ReLU after every hidden layer, linear output."""
    B = x.shape[0]
    din_p, hp = w_first.shape
    dout_p = w_out.shape[1]

    # Batch padding: multiple of 16 (bf16 sublane packing); 128-row M tiles
    # when the batch is large so the two v7x TensorCores split it.
    if B > 128:
        bp = _round_up(B, 128)
        mb = 128
    else:
        bp = _round_up(B, SUBLANE_BF16)
        mb = bp
    nb = bp // mb
    nl = max(n_mid, 1)

    # Only the (cheap, activation-sized) input padding happens per call.
    x_p = (jnp.zeros((bp, din_p), jnp.bfloat16)
           .at[:B, :input_dim].set(x.astype(jnp.bfloat16)))

    # VMEM budget: resident first/last weights + 2 buffered mid-layer weights
    # + activation scratch + in/out tiles, with a conservative 2x + margin.
    block_bytes = (mb * din_p * 2 + din_p * hp * 2 + hp * 4
                   + 2 * (hp * hp * 2 + hp * 4)
                   + hp * dout_p * 2 + dout_p * 4
                   + mb * dout_p * 4 + mb * hp * 2)
    vmem_limit = int(min(max(2 * block_bytes + (4 << 20), 32 << 20), 100 << 20))

    flops = 2 * bp * (din_p * hp + n_mid * hp * hp + hp * dout_p)
    bytes_accessed = (x_p.size * 2 + w_first.size * 2 + b_first.size * 4
                      + w_mid.size * 2 + b_mid.size * 4
                      + w_out.size * 2 + b_out.size * 4 + bp * dout_p * 4)

    kernel = functools.partial(_fused_mlp_kernel, has_mid=n_mid > 0)
    out_p = pl.pallas_call(
        kernel,
        out_shape=jax.ShapeDtypeStruct((bp, dout_p), jnp.float32),
        grid_spec=pltpu.PrefetchScalarGridSpec(
            num_scalar_prefetch=0,
            grid=(nb, nl),
            in_specs=[
                pl.BlockSpec((mb, din_p), lambda b, l: (b, 0)),       # x tile
                pl.BlockSpec((din_p, hp), lambda b, l: (0, 0)),       # W_first
                pl.BlockSpec((1, hp), lambda b, l: (0, 0)),           # b_first
                pl.BlockSpec((1, hp, hp), lambda b, l: (l, 0, 0)),    # W_mid[l]
                pl.BlockSpec((1, 1, hp), lambda b, l: (l, 0, 0)),     # b_mid[l]
                pl.BlockSpec((hp, dout_p), lambda b, l: (0, 0)),      # W_out
                pl.BlockSpec((1, dout_p), lambda b, l: (0, 0)),       # b_out
            ],
            out_specs=pl.BlockSpec((mb, dout_p), lambda b, l: (b, 0)),
            scratch_shapes=[pltpu.VMEM((mb, hp), jnp.bfloat16)],
        ),
        compiler_params=pltpu.CompilerParams(
            dimension_semantics=("parallel", "arbitrary"),
            vmem_limit_bytes=vmem_limit),
        cost_estimate=pl.CostEstimate(
            flops=flops, transcendentals=0, bytes_accessed=bytes_accessed),
    )(x_p, w_first, b_first, w_mid, b_mid, w_out, b_out)

    # Slice the padded, lane-dense output slab back to the logical shape.
    return out_p[:B, :output_dim]


def init_mlp_params(key, input_dim, hidden_dim, output_dim, n_hidden_layers):
    """Deterministic init mimicking nn.Linear (uniform +/- 1/sqrt(fan_in)).

    Weights stored as (in_features, out_features) so each layer is y = x @ W + b.
    """
    dims = [input_dim] + [hidden_dim] * n_hidden_layers + [output_dim]
    params = []
    for i in range(len(dims) - 1):
        fan_in, fan_out = dims[i], dims[i + 1]
        key, kw, kb = jax.random.split(key, 3)
        bound = 1.0 / jnp.sqrt(float(fan_in))
        w = jax.random.uniform(kw, (fan_in, fan_out), jnp.float32, -bound, bound)
        b = jax.random.uniform(kb, (1, fan_out), jnp.float32, -bound, bound)
        params.append((w, b))
    return params


def _mlp_reference(x, params):
    """Pure-JAX f32 reference of MLP.forward for a sanity check."""
    out = x
    for w, b in params[:-1]:
        out = jnp.maximum(out @ w + b, 0.0)
    w, b = params[-1]
    return out @ w + b


if __name__ == "__main__":
    # Small, forward-consistent shapes.
    batch = 8
    input_dim = 32
    hidden_dim = 64
    output_dim = 16
    n_hidden_layers = 3

    key = jax.random.PRNGKey(0)
    key_x, key_p = jax.random.split(key)
    x = jax.random.normal(key_x, (batch, input_dim), dtype=jnp.float32)
    params = init_mlp_params(key_p, input_dim, hidden_dim, output_dim,
                             n_hidden_layers)

    # Pad + stack weights ONCE; reuse the padded tensors across forward calls.
    packed, (in_d, out_d, n_mid) = prepare_mlp_params(params)

    fwd = jax.jit(functools.partial(mlp_forward, input_dim=in_d,
                                    output_dim=out_d, n_mid=n_mid))
    out = fwd(x, *packed)
    jax.block_until_ready(out)
    assert out.shape == (batch, output_dim)

    # Loose tolerance: bf16 matmul operands / activations, f32 accumulation.
    ref = _mlp_reference(x, params)
    assert jnp.allclose(out, ref, rtol=1e-1, atol=1e-1), (
        float(jnp.max(jnp.abs(out - ref))))

    print("KERNEL_OK")
</pallas_src>

<mosaic_0001>
module attributes {stable_mosaic.version = 11 : i64} {
  func.func @_fused_mlp_kernel(%arg0: i32, %arg1: i32, %arg2: memref<16x128xbf16, #tpu.memory_space<vmem>>, %arg3: memref<128x128xbf16, #tpu.memory_space<vmem>>, %arg4: memref<1x128xf32, #tpu.memory_space<vmem>>, %arg5: memref<1x128x128xbf16, #tpu.memory_space<vmem>>, %arg6: memref<1x1x128xf32, #tpu.memory_space<vmem>>, %arg7: memref<128x128xbf16, #tpu.memory_space<vmem>>, %arg8: memref<1x128xf32, #tpu.memory_space<vmem>>, %arg9: memref<16x128xf32, #tpu.memory_space<vmem>>, %arg10: memref<16x128xbf16, #tpu.memory_space<vmem>>) attributes {dimension_semantics = [#tpu.dimension_semantics<parallel>, #tpu.dimension_semantics<arbitrary>], iteration_bounds = array<i64: 1, 2>, scalar_prefetch = 0 : i64, scratch_operands = 1 : i64, tpu.core_type = #tpu.core_type<tc>, window_params = [{transform_indices = @transform_0, window_bounds = array<i64: 16, 128>}, {pipeline_mode = #tpu.pipeline_mode<synchronous>, transform_indices = @transform_1, window_bounds = array<i64: 128, 128>}, {pipeline_mode = #tpu.pipeline_mode<synchronous>, transform_indices = @transform_2, window_bounds = array<i64: 1, 128>}, {transform_indices = @transform_3, window_bounds = array<i64: 1, 128, 128>}, {transform_indices = @transform_4, window_bounds = array<i64: 1, 1, 128>}, {pipeline_mode = #tpu.pipeline_mode<synchronous>, transform_indices = @transform_5, window_bounds = array<i64: 128, 128>}, {pipeline_mode = #tpu.pipeline_mode<synchronous>, transform_indices = @transform_6, window_bounds = array<i64: 1, 128>}, {transform_indices = @transform_7, window_bounds = array<i64: 16, 128>}]} {
    %c0_i32 = arith.constant 0 : i32
    %0 = arith.cmpi eq, %arg1, %c0_i32 : i32
    %1 = arith.extui %0 : i1 to i32
    %c0_i32_0 = arith.constant 0 : i32
    %2 = arith.cmpi ne, %1, %c0_i32_0 : i32
    scf.if %2 {
      %c0_12 = arith.constant 0 : index
      %c0_13 = arith.constant 0 : index
      %18 = vector.load %arg2[%c0_12, %c0_13] : memref<16x128xbf16, #tpu.memory_space<vmem>>, vector<16x128xbf16>
      %c0_14 = arith.constant 0 : index
      %c0_15 = arith.constant 0 : index
      %19 = vector.load %arg3[%c0_14, %c0_15] : memref<128x128xbf16, #tpu.memory_space<vmem>>, vector<128x128xbf16>
      %cst_16 = arith.constant dense<0.000000e+00> : vector<16x128xf32>
      %20 = tpu.matmul %18, %19, %cst_16 {dimension_numbers = #tpu.dot_dimension_numbers<[1], [0], [0], [1], [0, 0, 1, 1], [], []>} : vector<16x128xbf16>, vector<128x128xbf16>, vector<16x128xf32> -> vector<16x128xf32>
      %c0_17 = arith.constant 0 : index
      %c0_18 = arith.constant 0 : index
      %21 = vector.load %arg4[%c0_17, %c0_18] : memref<1x128xf32, #tpu.memory_space<vmem>>, vector<1x128xf32>
      %22 = vector.broadcast %21 : vector<1x128xf32> to vector<16x128xf32>
      %23 = arith.addf %20, %22 : vector<16x128xf32>
      %cst_19 = arith.constant 0.000000e+00 : f32
      %24 = vector.broadcast %cst_19 : f32 to vector<16x128xf32>
      %25 = arith.maximumf %23, %24 : vector<16x128xf32>
      %26 = arith.truncf %25 : vector<16x128xf32> to vector<16x128xbf16>
      %c0_20 = arith.constant 0 : index
      %c0_21 = arith.constant 0 : index
      %27 = vector.load %arg10[%c0_20, %c0_21] : memref<16x128xbf16, #tpu.memory_space<vmem>>, vector<16x128xbf16>
      tpu.vector_store %arg10[%c0_20, %c0_21], %26 {strides = array<i32>} : memref<16x128xbf16, #tpu.memory_space<vmem>>, vector<16x128xbf16>,
    } else {
    }
    %c0 = arith.constant 0 : index
    %c0_1 = arith.constant 0 : index
    %3 = vector.load %arg10[%c0, %c0_1] : memref<16x128xbf16, #tpu.memory_space<vmem>>, vector<16x128xbf16>
    %c0_2 = arith.constant 0 : index
    %c0_3 = arith.constant 0 : index
    %c0_4 = arith.constant 0 : index
    %4 = vector.load %arg5[%c0_2, %c0_3, %c0_4] : memref<1x128x128xbf16, #tpu.memory_space<vmem>>, vector<1x128x128xbf16>
    %5 = vector.shape_cast %4 : vector<1x128x128xbf16> to vector<128x128xbf16>
    %cst = arith.constant dense<0.000000e+00> : vector<16x128xf32>
    %6 = tpu.matmul %3, %5, %cst {dimension_numbers = #tpu.dot_dimension_numbers<[1], [0], [0], [1], [0, 0, 1, 1], [], []>} : vector<16x128xbf16>, vector<128x128xbf16>, vector<16x128xf32> -> vector<16x128xf32>
    %c0_5 = arith.constant 0 : index
    %c0_6 = arith.constant 0 : index
    %c0_7 = arith.constant 0 : index
    %7 = vector.load %arg6[%c0_5, %c0_6, %c0_7] : memref<1x1x128xf32, #tpu.memory_space<vmem>>, vector<1x1x128xf32>
    %8 = vector.shape_cast %7 : vector<1x1x128xf32> to vector<1x128xf32>
    %9 = vector.broadcast %8 : vector<1x128xf32> to vector<16x128xf32>
    %10 = arith.addf %6, %9 : vector<16x128xf32>
    %cst_8 = arith.constant 0.000000e+00 : f32
    %11 = vector.broadcast %cst_8 : f32 to vector<16x128xf32>
    %12 = arith.maximumf %10, %11 : vector<16x128xf32>
    %13 = arith.truncf %12 : vector<16x128xf32> to vector<16x128xbf16>
    %c0_9 = arith.constant 0 : index
    %c0_10 = arith.constant 0 : index
    %14 = vector.load %arg10[%c0_9, %c0_10] : memref<16x128xbf16, #tpu.memory_space<vmem>>, vector<16x128xbf16>
    tpu.vector_store %arg10[%c0_9, %c0_10], %13 {strides = array<i32>} : memref<16x128xbf16, #tpu.memory_space<vmem>>, vector<16x128xbf16>,
    %c1_i32 = arith.constant 1 : i32
    %15 = arith.cmpi eq, %arg1, %c1_i32 : i32
    %16 = arith.extui %15 : i1 to i32
    %c0_i32_11 = arith.constant 0 : i32
    %17 = arith.cmpi ne, %16, %c0_i32_11 : i32
    scf.if %17 {
      %c0_12 = arith.constant 0 : index
      %c0_13 = arith.constant 0 : index
      %18 = vector.load %arg10[%c0_12, %c0_13] : memref<16x128xbf16, #tpu.memory_space<vmem>>, vector<16x128xbf16>
      %c0_14 = arith.constant 0 : index
      %c0_15 = arith.constant 0 : index
      %19 = vector.load %arg7[%c0_14, %c0_15] : memref<128x128xbf16, #tpu.memory_space<vmem>>, vector<128x128xbf16>
      %cst_16 = arith.constant dense<0.000000e+00> : vector<16x128xf32>
      %20 = tpu.matmul %18, %19, %cst_16 {dimension_numbers = #tpu.dot_dimension_numbers<[1], [0], [0], [1], [0, 0, 1, 1], [], []>} : vector<16x128xbf16>, vector<128x128xbf16>, vector<16x128xf32> -> vector<16x128xf32>
      %c0_17 = arith.constant 0 : index
      %c0_18 = arith.constant 0 : index
      %21 = vector.load %arg8[%c0_17, %c0_18] : memref<1x128xf32, #tpu.memory_space<vmem>>, vector<1x128xf32>
      %22 = vector.broadcast %21 : vector<1x128xf32> to vector<16x128xf32>
      %23 = arith.addf %20, %22 : vector<16x128xf32>
      %c0_19 = arith.constant 0 : index
      %c0_20 = arith.constant 0 : index
      %24 = vector.load %arg9[%c0_19, %c0_20] : memref<16x128xf32, #tpu.memory_space<vmem>>, vector<16x128xf32>
      tpu.vector_store %arg9[%c0_19, %c0_20], %23 {strides = array<i32>} : memref<16x128xf32, #tpu.memory_space<vmem>>, vector<16x128xf32>,
    } else {
    }
    return
  }
  func.func @transform_0(%arg0: i32, %arg1: i32) -> (i32, i32) {
    %c0_i32 = arith.constant 0 : i32
    %c0_i32_0 = arith.constant 0 : i32
    return %arg0, %c0_i32 : i32, i32
  }
  func.func @transform_1(%arg0: i32, %arg1: i32) -> (i32, i32) {
    %c0_i32 = arith.constant 0 : i32
    %c0_i32_0 = arith.constant 0 : i32
    %c0_i32_1 = arith.constant 0 : i32
    return %c0_i32, %c0_i32_0 : i32, i32
  }
  func.func @transform_2(%arg0: i32, %arg1: i32) -> (i32, i32) {
    %c0_i32 = arith.constant 0 : i32
    %c0_i32_0 = arith.constant 0 : i32
    %c0_i32_1 = arith.constant 0 : i32
    return %c0_i32, %c0_i32_0 : i32, i32
  }
  func.func @transform_3(%arg0: i32, %arg1: i32) -> (i32, i32, i32) {
    %c0_i32 = arith.constant 0 : i32
    %c0_i32_0 = arith.constant 0 : i32
    %c0_i32_1 = arith.constant 0 : i32
    return %arg1, %c0_i32, %c0_i32_0 : i32, i32, i32
  }
  func.func @transform_4(%arg0: i32, %arg1: i32) -> (i32, i32, i32) {
    %c0_i32 = arith.constant 0 : i32
    %c0_i32_0 = arith.constant 0 : i32
    %c0_i32_1 = arith.constant 0 : i32
    return %arg1, %c0_i32, %c0_i32_0 : i32, i32, i32
  }
  func.func @transform_5(%arg0: i32, %arg1: i32) -> (i32, i32) {
    %c0_i32 = arith.constant 0 : i32
    %c0_i32_0 = arith.constant 0 : i32
    %c0_i32_1 = arith.constant 0 : i32
    return %c0_i32, %c0_i32_0 : i32, i32
  }
  func.func @transform_6(%arg0: i32, %arg1: i32) -> (i32, i32) {
    %c0_i32 = arith.constant 0 : i32
    %c0_i32_0 = arith.constant 0 : i32
    %c0_i32_1 = arith.constant 0 : i32
    return %c0_i32, %c0_i32_0 : i32, i32
  }
  func.func @transform_7(%arg0: i32, %arg1: i32) -> (i32, i32) {
    %c0_i32 = arith.constant 0 : i32
    %c0_i32_0 = arith.constant 0 : i32
    return %arg0, %c0_i32 : i32, i32
  }
}

</mosaic_0001>

<bundles_post_ra>
// kernel: mlp_forward.1
= control target key start
LH: loop header
LB: loop body
LE: loop exit
PB: predicated region body
PF: predicated region fallthrough
CT: control target
= control target key end

     0   :  { %s1402_s0 = inlined_call_operand.vmem [shape: bf16[16,128], index: 0, kind: input, shape index: {}]   ;;  %s1403_s1 = inlined_call_operand.hbm [shape: bf16[128,128], index: 1, kind: input, shape index: {}]   ;;  %s1404_s2 = inlined_call_operand.vmem [shape: f32[1,128], index: 2, kind: input, shape index: {}]   ;;  %s1405_s3 = inlined_call_operand.hbm [shape: bf16[2,128,128], index: 3, kind: input, shape index: {}]   ;;  %s1406_s4 = inlined_call_operand.vmem [shape: f32[2,1,128], index: 4, kind: input, shape index: {}]   ;;  %s1407_s5 = inlined_call_operand.hbm [shape: bf16[128,128], index: 5, kind: input, shape index: {}]   ;;  %s1408_s6 = inlined_call_operand.vmem [shape: f32[1,128], index: 6, kind: input, shape index: {}]   ;;  %s1409_s7 = inlined_call_operand.vmem [shape: f32[16,128], index: 7, kind: output, shape index: {}]  }
   0x1   :  { %1413 = sst [smem:[#allocation11_spill]] %s1403_s1 }
   0x2   :  { %1414 = sst [smem:[#allocation12_spill]] %s1407_s5 }
   0x3   :  { %12 = vsyncpa [#allocation4], 0 }
   0x4   :  { %13 = vsyncpa [#allocation6], 0 }
   0x5   :  { %15 = vsyncpa [#allocation6 + $0x1], 0  ;;  %s1233_s24 = smov 0   ;;  %s1235_s25 = smov 0  }
   0x6   :  { %s1237_s26 = smov 0   ;;  %s1239_s27 = smov 0  }
   0x7   :  { %s1241_s28 = smov 0   ;;  %s1243_s29 = smov 0  }
   0x8 LB: > { %s1410_s30 = sadd.s32 4294967295, %s1187_s29   ;;  %p121_p0 = scmp.ne.s32.totalorder %s1171_s25, %s1167_s24  ;;  %s1187_s29 = sphi %s1243_s29, %s21_s29   ;;  %s1183_s28 = sphi %s1241_s28, %s1428_s28   ;;  %s1179_s27 = sphi %s1239_s27, %s1427_s27   ;;  %s1175_s26 = sphi %s1237_s26, %s1426_s26   ;;  %s1171_s25 = sphi %s1235_s25, %s1425_s25   ;;  %s1167_s24 = sphi %s1233_s24, %s1424_s24  }
   0x9   : > { %p1265_p1 = scmp.eq.s32.totalorder %s1410_s30, 0  ;;  %p794_p2 = scmp.ge.s32.totalorder %s1187_s29, 1 }
   0xa   : > { %p226_p3 = scmp.lt.s32.totalorder %s1187_s29, 3  ;;  %s1418_s5 = sld [smem:[#allocation12_spill]] }
   0xb   : > { %p1273_p4 = por %p1265_p1, %p121_p0  ;;  %s1189_s14 = smov [#allocation7]  }
   0xc   : > { %p1277_p5 = pnand %p794_p2, %p226_p3  ;;  %s265_s15 = sshll.u32 %s1189_s14, 4  ;;  %s266_s15 = int_to_ptr.vmem [resolvable:$true] %s265_s15 }
   0xd   : > { %s1419_s1 = sld [smem:[#allocation11_spill]]  ;;  %s1411_s19 = smov 64  }
   0xe   : > { %p968_p6 = pneg %p1277_p5  ;;  %s1412_s20 = smov 4  }
   0xf   : > { %s1192_s21 = smov [#allocation3]   ;;  %s30_s23 = sadd.s32 1, %s1183_s28 }
  0x10   : > { %s263_s13 = sshll.u32 %s1418_s5, 4  ;;  %p969_p7 = pnand %p968_p6, %p1265_p1  ;;  %s264_s13 = int_to_ptr.hbm [resolvable:$true] %s263_s13 }
  0x11   : > { %s248_s22 = sshll.u32 %s1192_s21, 4  ;;  %p31_p8 = scmp.ge.s32.totalorder %s30_s23, 2  ;;  %s249_s22 = int_to_ptr.vmem [resolvable:$true] %s248_s22 }
  0x12   : > { %974 = dma.hbm_to_vmem [thread:$0]  (!%p969_p7), %s264_s13, 1024, %s266_s15, [#allocation6], %s1411_s19, %s1411_s19, %s1412_s20  }
  0x13   : > { %s246_s18 = sshll.u32 %s1419_s1, 4  ;;  %p115_p9 = scmp.ne.s32.totalorder %s1175_s26, %s1171_s25  ;;  %s247_s18 = int_to_ptr.hbm [resolvable:$true] %s246_s18 }
  0x14   : > { %971 = dma.hbm_to_vmem [thread:$0]  (!%p969_p7), %s247_s18, 1024, %s249_s22, [#allocation4], %s1411_s19, %s1411_s19, %s1412_s20  }
  0x15   : > { %s108_s24 = sadd.s32 1, %s1175_s26  ;;  %p116_p10 = scmp.eq.s32.totalorder %s1187_s29, 0 }
  0x16   : > { %s1430_s23 = smov (%p31_p8, %s30_s23), 0  ;;  %p981_p12 = scmp.lt.s32.totalorder %s1187_s29, 2 }
  0x17   : > { %p1304_p11 = por %p116_p10, %p115_p9  ;;  %s105_s12 = ssub.s32 %s1183_s28, %s1430_s23 }
  0x18   : > { %s282_s13 = sand.u32 1, %s1187_s29   ;;  %p106_p13 = scmp.eq.s32.totalorder %s105_s12, 0 }
  0x19   : > { %s284_s14 = sand.u32 1, %s1175_s26   ;;  %s920_s16 = sshll.u32 %s1183_s28, 6 }
  0x1a   : > { %s799_s15 = sshll.u32 %s284_s14, 6  ;;  %s291_s22 = scalar_lea.hbm %s1405_s3, %s920_s16 }
  0x1b   : > { %s1315_s17 = scalar_select %p106_p13, %s1175_s26, %s108_s24  }
  0x1c   : > { %s292_s30 = sshll.u32 %s291_s22, 4  ;;  %s286_s19 = scalar_lea.vmem [#allocation5], %s799_s15  ;;  %s293_s30 = int_to_ptr.hbm [resolvable:$true] %s292_s30 }
  0x1d   : > { %s294_s20 = sshll.u32 %s286_s19, 4  ;;  %p976_p0 = pnand %p981_p12, %p1304_p11  ;;  %s295_s20 = int_to_ptr.vmem [resolvable:$true] %s294_s20 }
  0x1e   : > { %s283_s1 = scalar_lea.sflag [#allocation6], %s282_s13  ;;  %s1421_s5 = smov 4  }
  0x1f   : > { %s1422_s12 = smov 64   ;;  %312 = sbr.rel (%p1277_p5) target bundleno = 566 (0x236), region = 48 }
  0x20   : > { %978 = dma.hbm_to_vmem [thread:$0]  (!%p976_p0), %s293_s30, 1024, %s295_s20, %s283_s1, %s1422_s12, %s1422_s12, %s1421_s5  }
  0x24   : > { %1154 = dma.done.wait (%p1265_p1), [#allocation4], 1024  }
  0x25   : > { %1156 = vsyncadd (%p1265_p1), [#allocation4], 4294966272  ;;  %s1423_s19 = sadd.s32 4294967295, %s1187_s29   ;;  %s321_s11 = sand.u32 1, %s1171_s25  }
  0x26   : > { %s319_s24 = sand.u32 1, %s1423_s19   ;;  %s804_s13 = sshll.u32 %s321_s11, 6 }
  0x27   : > { %s320_s14 = scalar_lea.sflag [#allocation6], %s319_s24  ;;  %s1336_s15 = scalar_lea.vmem [#allocation5], %s804_s13 }
  0x28   : > { %1158 = dma.done.wait (%p1273_p4), %s320_s14, 1024  }
  0x29   : > { %1160 = vsyncadd (%p1273_p4), %s320_s14, 4294966272 }
  0x2a   : > { %1162 = dma.done.wait (%p1265_p1), [#allocation6], 1024  }
  0x2b   : > { %1164 = vsyncadd (%p1265_p1), [#allocation6], 4294966272  ;;  %p374_p2 = scmp.lt.s32.totalorder %s1179_s27, 1  ;;  %p806_p3 = scmp.ne.s32.totalorder %s1179_s27, 0 }
  0x2d   : > { %s1348_s1 = scalar_select %p374_p2, %s1179_s27, 1 }
  0x2e   : > { %386 = sbr.rel (%p806_p3) target bundleno = 224 (0xe0), region = 64 }
  0x2f   : > { %s376_s10 = scalar_lea.vmem %s1406_s4, %s1348_s1 }
  0x33   : > { %v929_v0 = vld [vmem:[#allocation3 + $0x38] sm:$0xff]  ;;  %v928_v1 = vld [vmem:[#allocation3 + $0x30] sm:$0xff]  ;;  %v927_v2 = vld [vmem:[#allocation3 + $0x28] sm:$0xff] }
  0x34   : > { %463 = vmatpush.bf16.msra.mxu0 %v929_v0  ;;  %v926_v3 = vld [vmem:[#allocation3 + $0x20] sm:$0xff]  ;;  %v925_v4 = vld [vmem:[#allocation3 + $0x18] sm:$0xff]  ;;  %v924_v5 = vld [vmem:[#allocation3 + $0x10] sm:$0xff] }
  0x35   : > { %v923_v6 = vld [vmem:[#allocation3 + $0x8] sm:$0xff]  ;;  %v922_v7 = vld [vmem:[#allocation3] sm:$0xff]  ;;  %v921_v8 = vld [vmem:[%s1402_s0] sm:$0xff] }
  0x36   : > { %v1036_v10 = vld [vmem:[%s1404_s2] ss:$0 sm:$0xff] }
  0x38   : > { %464 = vmatpush.bf16.msra.mxu0 %v928_v1 }
  0x3c   : > { %465 = vmatpush.bf16.msra.mxu0 %v927_v2 }
  0x40   : > { %466 = vmatpush.bf16.msra.mxu0 %v926_v3 }
  0x44   : > { %467 = vmatpush.bf16.msra.mxu0 %v925_v4 }
  0x48   : > { %468 = vmatpush.bf16.msra.mxu0 %v924_v5 }
  0x4c   : > { %469 = vmatpush.bf16.msra.mxu0 %v923_v6 }
  0x50   : > { %470 = vmatpush.bf16.msra.mxu0 %v922_v7 }
  0x53   : > { %471 = vmatmul.bf16.vlgmr.msra.gmra.mxu0 %v921_v8 }
  0xd0   : > { %v472_v9 = vpop.f32.mrf.mxu0 }
  0xd1   : > { %v473_v11 = vadd.f32 %v1036_v10, %v472_v9 }
  0xd3   : > { %v477_v14 = vmax.f32 %v473_v11, 0.0 }
  0xd8   : > { %v474_v12 = vpop.f32.mrf.mxu0 }
  0xd9   : > { %v475_v13 = vadd.f32 %v1036_v10, %v474_v12 }
  0xdb   : > { %v478_v15 = vmax.f32 %v475_v13, 0.0 }
  0xdd   : > { %v951_v16 = vpack.c.bf16 %v478_v15, %v477_v14 }
  0xdf   : > { %952 = vst [vmem:[#allocation2] sm:$0xff] %v951_v16  }
  0xe0 PF: > { %v938_v17 = vld [vmem:[%s1336_s15 + $0x38] sm:$0xff]  ;;  %v937_v18 = vld [vmem:[%s1336_s15 + $0x30] sm:$0xff]  ;;  %v936_v19 = vld [vmem:[%s1336_s15 + $0x28] sm:$0xff]  ;;  %p879_p1 = scmp.ne.s32.totalorder %s1179_s27, 1 }
  0xe1   : > { %559 = vmatpush.bf16.msra.mxu0 %v938_v17  ;;  %v935_v20 = vld [vmem:[%s1336_s15 + $0x20] sm:$0xff]  ;;  %v934_v21 = vld [vmem:[%s1336_s15 + $0x18] sm:$0xff]  ;;  %v933_v22 = vld [vmem:[%s1336_s15 + $0x10] sm:$0xff] }
  0xe2   : > { %v932_v23 = vld [vmem:[%s1336_s15 + $0x8] sm:$0xff]  ;;  %v931_v24 = vld [vmem:[%s1336_s15] sm:$0xff]  ;;  %v1037_v27 = vld [vmem:[%s376_s10] ss:$0 sm:$0xff] }
  0xe5   : > { %560 = vmatpush.bf16.msra.mxu0 %v937_v18 }
  0xe6   : > { %v930_v25 = vld [vmem:[#allocation2] sm:$0xff] }
  0xe9   : > { %561 = vmatpush.bf16.msra.mxu0 %v936_v19 }
  0xed   : > { %562 = vmatpush.bf16.msra.mxu0 %v935_v20 }
  0xf1   : > { %563 = vmatpush.bf16.msra.mxu0 %v934_v21 }
  0xf5   : > { %564 = vmatpush.bf16.msra.mxu0 %v933_v22 }
  0xf9   : > { %565 = vmatpush.bf16.msra.mxu0 %v932_v23 }
  0xfd   : > { %566 = vmatpush.bf16.msra.mxu0 %v931_v24 }
 0x100   : > { %567 = vmatmul.bf16.vlgmr.msra.gmra.mxu0 %v930_v25 }
 0x17d   : > { %v568_v26 = vpop.f32.mrf.mxu0 }
 0x17e   : > { %v569_v28 = vadd.f32 %v1037_v27, %v568_v26 }
 0x180   : > { %v573_v31 = vmax.f32 %v569_v28, 0.0 }
 0x185   : > { %v570_v29 = vpop.f32.mrf.mxu0 }
 0x186   : > { %v571_v30 = vadd.f32 %v1037_v27, %v570_v29 }
 0x188   : > { %v574_v32 = vmax.f32 %v571_v30, 0.0  ;;  %582 = sbr.rel (%p879_p1) target bundleno = 566 (0x236), region = 68 }
 0x18a   : > { %v956_v33 = vpack.c.bf16 %v574_v32, %v573_v31 }
 0x18c   : > { %957 = vst [vmem:[#allocation2] sm:$0xff] %v956_v33  }
 0x18d   : > { %v947_v34 = vld [vmem:[#allocation7 + $0x38] sm:$0xff]  ;;  %v946_v35 = vld [vmem:[#allocation7 + $0x30] sm:$0xff]  ;;  %v945_v36 = vld [vmem:[#allocation7 + $0x28] sm:$0xff] }
 0x18e   : > { %659 = vmatpush.bf16.msra.mxu0 %v947_v34  ;;  %v944_v37 = vld [vmem:[#allocation7 + $0x20] sm:$0xff]  ;;  %v943_v38 = vld [vmem:[#allocation7 + $0x18] sm:$0xff]  ;;  %v942_v39 = vld [vmem:[#allocation7 + $0x10] sm:$0xff] }
 0x18f   : > { %v941_v40 = vld [vmem:[#allocation7 + $0x8] sm:$0xff]  ;;  %v940_v41 = vld [vmem:[#allocation7] sm:$0xff]  ;;  %v1038_v43 = vld [vmem:[%s1408_s6] ss:$0 sm:$0xff] }
 0x192   : > { %660 = vmatpush.bf16.msra.mxu0 %v946_v35 }
 0x193   : > { %v939_v42 = vld [vmem:[#allocation2] sm:$0xff] }
 0x196   : > { %661 = vmatpush.bf16.msra.mxu0 %v945_v36 }
 0x19a   : > { %662 = vmatpush.bf16.msra.mxu0 %v944_v37 }
 0x19e   : > { %663 = vmatpush.bf16.msra.mxu0 %v943_v38 }
 0x1a2   : > { %664 = vmatpush.bf16.msra.mxu0 %v942_v39 }
 0x1a6   : > { %665 = vmatpush.bf16.msra.mxu0 %v941_v40 }
 0x1aa   : > { %666 = vmatpush.bf16.msra.mxu0 %v940_v41 }
 0x1ad   : > { %667 = vmatmul.bf16.vlgmr.msra.gmra.mxu0 %v939_v42 }
 0x22a   : > { %v668_v44 = vpop.f32.mrf.mxu0 }
 0x22b   : > { %v669_v45 = vadd.f32 %v1038_v43, %v668_v44 }
 0x22d   : > { %673 = vst [vmem:[%s1409_s7] sm:$0xff] %v669_v45 }
 0x232   : > { %v670_v46 = vpop.f32.mrf.mxu0 }
 0x233   : > { %v671_v47 = vadd.f32 %v1038_v43, %v670_v46 }
 0x235   : > { %674 = vst [vmem:[%s1409_s7 + $0x8] sm:$0xff] %v671_v47 }
 0x236 PF: > { %s21_s29 = sadd.s32 1, %s1187_s29   ;;  %s1424_s24 = smov %s1171_s25 }
 0x237   : > { %p18_p4 = scmp.ge.s32.totalorder %s21_s29, 4   ;;  %s1425_s25 = smov %s1175_s26 }
 0x238   : > { %s1426_s26 = smov %s1315_s17  ;;  %s1427_s27 = smov %s1183_s28 }
 0x239   : > { %s1428_s28 = smov %s1430_s23  ;;  %20 = sbr.rel (!%p18_p4) target bundleno = 8 (0x8), region = 111 }
 0x23e   :  { %697 = vsyncpa [#allocation4], 1 }
 0x23f   :  { %699 = vsyncpa [#allocation4 + $0x1], 1 }
 0x240   :  { %700 = vsyncpa [#allocation6], 1 }
 0x241   :  { %702 = vsyncpa [#allocation6 + $0x1], 1 }

</bundles_post_ra>
